<compile_context>
chip_gen: v5e
topology: v5e:2x2
jax: 0.10.0
libtpu: 0.0.40
codegen_flags: <defaults>
</compile_context>

<pallas_src>
import jax
import jax.numpy as jnp
import numpy as np
from jax.experimental import pallas as pl
from jax.experimental.pallas import tpu as pltpu


def _identity_kernel(x_ref, o_ref):
    o_ref[...] = x_ref[...]


# Rows per block for the tiled (large-batch) path.  Double-buffered in + out is
# 4 * _TILE_B * 512 * 4 B = 8 MiB, comfortably inside v5e's 16 MiB scoped-VMEM
# default and trivially inside v6e/v7x budgets.
_TILE_B = 1024


def attention_fuser_forward(batch_face_emb):
    """AttentionFuser.forward: identity passthrough of the face embeddings."""
    B, D = batch_face_emb.shape

    if B <= _TILE_B:
        # Small-batch fast path: single VMEM block, no grid, output aliased
        # onto the input so the kernel degenerates to a VMEM-resident touch.
        return pl.pallas_call(
            _identity_kernel,
            out_shape=jax.ShapeDtypeStruct((B, D), batch_face_emb.dtype),
            in_specs=[pl.BlockSpec(memory_space=pltpu.MemorySpace.VMEM)],
            out_specs=pl.BlockSpec(memory_space=pltpu.MemorySpace.VMEM),
            input_output_aliases={0: 0},
        )(batch_face_emb)

    # Large-batch path: tile the batch axis (multiple of 8 sublanes for f32,
    # full 512-wide = 4x128 lane-dense embedding dim per block) so HBM reads,
    # the copy, and writebacks pipeline.  Output still aliases the input.
    return pl.pallas_call(
        _identity_kernel,
        out_shape=jax.ShapeDtypeStruct((B, D), batch_face_emb.dtype),
        grid=(pl.cdiv(B, _TILE_B),),
        in_specs=[pl.BlockSpec((_TILE_B, D), lambda i: (i, 0))],
        out_specs=pl.BlockSpec((_TILE_B, D), lambda i: (i, 0)),
        input_output_aliases={0: 0},
    )(batch_face_emb)


if __name__ == "__main__":
    key = jax.random.PRNGKey(0)

    # Small, module-consistent input: batch of 8 face embeddings of dim 512
    # (Linear(512, 30) in __init__ implies an embedding dim of 512).
    batch_face_emb = jax.random.normal(key, (8, 512), dtype=jnp.float32)

    # Host reference copy BEFORE the call (the input buffer is donated /
    # aliased onto the output).
    expected = np.asarray(batch_face_emb)

    fwd = jax.jit(attention_fuser_forward, donate_argnums=(0,))
    out = fwd(batch_face_emb)
    out = jax.block_until_ready(out)

    # Semantic check: forward is an identity passthrough of the input.
    assert out.shape == expected.shape
    assert out.dtype == expected.dtype
    assert np.allclose(np.asarray(out), expected)

    print("KERNEL_OK")
</pallas_src>

<mosaic_0001>
module attributes {stable_mosaic.version = 11 : i64} {
  func.func @_identity_kernel(%arg0: memref<8x512xf32, #tpu.memory_space<vmem>>, %arg1: memref<8x512xf32, #tpu.memory_space<vmem>>) attributes {dimension_semantics = [], scalar_prefetch = 0 : i64, scratch_operands = 0 : i64, tpu.core_type = #tpu.core_type<tc>} {
    %c0 = arith.constant 0 : index
    %c0_0 = arith.constant 0 : index
    %0 = vector.load %arg0[%c0, %c0_0] : memref<8x512xf32, #tpu.memory_space<vmem>>, vector<8x512xf32>
    %c0_1 = arith.constant 0 : index
    %c0_2 = arith.constant 0 : index
    %1 = vector.load %arg1[%c0_1, %c0_2] : memref<8x512xf32, #tpu.memory_space<vmem>>, vector<8x512xf32>
    tpu.vector_store %arg1[%c0_1, %c0_2], %0 {strides = array<i32>} : memref<8x512xf32, #tpu.memory_space<vmem>>, vector<8x512xf32>,
    return
  }
}

</mosaic_0001>

<bundles_post_ra>
// kernel: attention_fuser_forward.1
= control target key start
LH: loop header
LB: loop body
LE: loop exit
PB: predicated region body
PF: predicated region fallthrough
CT: control target
= control target key end

     0   :  { %6 = vsyncpa [#allocation3], 0  ;;  %s120_s0 = inlined_call_operand.hbm [shape: f32[8,512], index: 0, kind: input, shape index: {}, may-alias: {0,1}]   ;;  %s121_s1 = inlined_call_operand.hbm [shape: f32[8,512], index: 1, kind: output, shape index: {}, may-alias: {0,1}]  }
   0x1   :  { %7 = vsyncpa [#allocation4], 0  ;;  %s13_s8 = sshll.u32 %s120_s0, 4  ;;  %s102_s9 = smov [#allocation2]   ;;  %s14_s8 = int_to_ptr.hbm [resolvable:$true] %s13_s8 }
   0x2   :  { %s15_s10 = sshll.u32 %s102_s9, 4  ;;  %s16_s10 = int_to_ptr.vmem [resolvable:$true] %s15_s10 }
   0x3   :  { %18 = dma.hbm_to_vmem [thread:$0]  %s14_s8, 512, %s16_s10, [#allocation3]  }
   0x4   :  { %98 = dma.done.wait [#allocation3], 512  }
   0x5   :  { %99 = vsyncadd [#allocation3], 4294966784  ;;  %s103_s11 = smov [#allocation5]   ;;  %s38_s15 = sshll.u32 %s121_s1, 4  ;;  %v23_v0 = vld [vmem:[#allocation2] sm:$0xff]  ;;  %v24_v1 = vld [vmem:[#allocation2 + $0x8] sm:$0xff]  ;;  %s39_s15 = int_to_ptr.hbm [resolvable:$true] %s38_s15 }
   0x6   :  { %s36_s12 = sshll.u32 %s103_s11, 4  ;;  %v25_v2 = vld [vmem:[#allocation2 + $0x10] sm:$0xff]  ;;  %27 = vst [vmem:[#allocation5] sm:$0xff] %v23_v0  ;;  %v26_v3 = vld [vmem:[#allocation2 + $0x18] sm:$0xff]  ;;  %s37_s12 = int_to_ptr.vmem [resolvable:$true] %s36_s12 }
   0x7   :  { %28 = vst [vmem:[#allocation5 + $0x8] sm:$0xff] %v24_v1 }
   0x8   :  { %29 = vst [vmem:[#allocation5 + $0x10] sm:$0xff] %v25_v2 }
   0x9   :  { %30 = vst [vmem:[#allocation5 + $0x18] sm:$0xff] %v26_v3 }
   0xa   :  { %41 = dma.vmem_to_hbm [thread:$0]  %s37_s12, 512, %s39_s15, [#allocation4]  }
   0xb   :  { %100 = dma.done.wait [#allocation4], 512  }
   0xc   :  { %101 = vsyncadd [#allocation4], 4294966784 }
   0xd   :  { %46 = vsyncpa [#allocation3], 1 }
   0xe   :  { %47 = vsyncpa [#allocation4], 1 }

</bundles_post_ra>
